<compile_context>
chip_gen: v7x
topology: tpu7x:2x2x1
jax: 0.10.0
libtpu: 0.0.40
codegen_flags: <defaults>
</compile_context>

<pallas_src>
import functools

import jax
import jax.numpy as jnp
from jax.experimental import pallas as pl
from jax.experimental.pallas import tpu as pltpu


def _round_up(x, m):
    return ((x + m - 1) // m) * m


# ---------------------------------------------------------------------------
# Kernel body: one row tile, whole layer stack.  refs = (W0, b0, W1, b1, ...,
# out).  Weights arrive already padded/cast; intermediates stay in VMEM/vregs.
# ---------------------------------------------------------------------------
def _fcnet_fused_kernel(x_ref, *refs, num_layers, apply_relu, compute_dtype):
    o_ref = refs[-1]
    h = x_ref[...]                                        # (tm, K0) f32
    for l in range(num_layers):
        w = refs[2 * l][...]                              # (K_l, N_l) compute_dtype
        b = refs[2 * l + 1][...]                          # (1, N_l) f32 -> broadcast
        h = jnp.dot(h.astype(compute_dtype), w,
                    preferred_element_type=jnp.float32) + b
        if apply_relu:
            h = jnp.maximum(h, 0.0)                       # f32 on the VPU
    o_ref[...] = h.astype(o_ref.dtype)


# ---------------------------------------------------------------------------
# Parameter packing (setup-time glue, done once per parameter set).
# ---------------------------------------------------------------------------
def pack_fcnet_params(params, compute_dtype=jnp.bfloat16):
    """Pad intermediate feature dims to multiples of 128 (lane/MXU dense) and
    cast weights to the MXU compute dtype.  Zero padding is mathematically
    inert (zero columns -> zero activations, incl. through ReLU -> zero rows
    of the next weight contribute nothing).  Biases stay f32."""
    packed = []
    n_layers = len(params)
    k_pad = params[0][0].shape[0]          # input feature dim: never padded
    for l, (w, b) in enumerate(params):
        k, n = w.shape
        n_pad = n if l == n_layers - 1 else _round_up(n, 128)
        w_p = jnp.zeros((k_pad, n_pad), jnp.float32)
        w_p = w_p.at[:k, :n].set(w).astype(compute_dtype)
        b_p = jnp.zeros((1, n_pad), jnp.float32).at[0, :n].set(b)
        packed.append((w_p, b_p))
        k_pad = n_pad
    return packed


# ---------------------------------------------------------------------------
# Fused forward over 2-D rows.
# ---------------------------------------------------------------------------
def fcnet_fused(x2d, packed_params, *, apply_relu=True,
                compute_dtype=jnp.bfloat16, out_dtype=jnp.float32,
                max_tm=512):
    """y = FCNet(x2d) with all layers fused into a single pallas_call.

    x2d: [M, K0] float32.  packed_params: output of pack_fcnet_params.
    """
    M, K0 = x2d.shape
    num_layers = len(packed_params)
    assert packed_params[0][0].shape[0] == K0, "param/input dim mismatch"
    n_last = packed_params[-1][0].shape[1]

    # ---- row tile ---------------------------------------------------------
    # Large tiles amortize the ~0.35 us per-grid-step overhead; bound by a
    # VMEM activation budget (double-buffered x + out tiles) and max_tm.
    out_isize = jnp.dtype(out_dtype).itemsize
    bytes_per_row = K0 * x2d.dtype.itemsize + n_last * out_isize
    act_budget = 16 << 20
    tm_cap = max(8, ((act_budget // (2 * bytes_per_row)) // 8) * 8)
    tm = min(max_tm, tm_cap, _round_up(M, 8))
    # v7x megacore: a big single-block problem should become >= 2 grid steps
    # so both TensorCores share the row axis.
    if M >= 512 and pl.cdiv(M, tm) < 2:
        tm = _round_up(pl.cdiv(M, 2), 8)
    grid = (pl.cdiv(M, tm),)      # partial last block is masked by Pallas

    # ---- specs / args -----------------------------------------------------
    in_specs = [pl.BlockSpec((tm, K0), lambda i: (i, 0))]
    call_args = [x2d]
    flops = 0
    weight_bytes = 0
    for (w, b) in packed_params:
        k, n = w.shape
        in_specs.append(pl.BlockSpec((k, n), lambda i: (0, 0)))   # resident W
        in_specs.append(pl.BlockSpec((1, n), lambda i: (0, 0)))   # resident b
        call_args.extend([w, b])
        flops += 2 * M * k * n
        weight_bytes += w.size * w.dtype.itemsize + b.size * b.dtype.itemsize

    # Scaling guard: full residency (x2 for default double buffering) must
    # stay well inside v7x's 64 MiB physical VMEM.
    if 2 * weight_bytes > (44 << 20):
        # TODO(synk): past this point, tile the widest layer's output-feature
        # dim as a second grid axis (or split the stack) instead of raising.
        raise ValueError("FCNet weights too large for full VMEM residency.")

    act_bytes = 2 * tm * bytes_per_row
    vmem_limit = int(min(64 << 20,
                         max(16 << 20, act_bytes + 2 * weight_bytes + (4 << 20))))
    bytes_accessed = (x2d.size * x2d.dtype.itemsize
                      + M * n_last * out_isize + weight_bytes)

    kernel = functools.partial(
        _fcnet_fused_kernel, num_layers=num_layers, apply_relu=apply_relu,
        compute_dtype=compute_dtype)

    return pl.pallas_call(
        kernel,
        out_shape=jax.ShapeDtypeStruct((M, n_last), out_dtype),
        grid_spec=pltpu.PrefetchScalarGridSpec(
            num_scalar_prefetch=0,
            grid=grid,
            in_specs=in_specs,
            out_specs=pl.BlockSpec((tm, n_last), lambda i: (i, 0)),
        ),
        compiler_params=pltpu.CompilerParams(
            dimension_semantics=("parallel",),
            vmem_limit_bytes=vmem_limit,
        ),
        cost_estimate=pl.CostEstimate(
            flops=int(flops),
            transcendentals=0,
            bytes_accessed=int(bytes_accessed),
        ),
    )(*call_args)


# ---------------------------------------------------------------------------
# Module-level glue (init + forward + pure-JAX reference).
# ---------------------------------------------------------------------------
def init_fcnet_params(key, dims):
    """nn.Linear init + weight_norm(dim=None).

    V ~ U(-1/sqrt(in), 1/sqrt(in)), bias likewise; weight_norm(dim=None)
    initializes g = ||V||_F so the effective weight g*V/||V||_F equals V at
    init.  The fold is kept explicit (it would be recomputed per step if g/V
    were trained separately).  Weights returned pre-transposed [in, out]."""
    params = []
    for i in range(len(dims) - 1):
        in_dim, out_dim = dims[i], dims[i + 1]
        key, kw, kb = jax.random.split(key, 3)
        bound = 1.0 / jnp.sqrt(in_dim)
        v = jax.random.uniform(kw, (out_dim, in_dim), jnp.float32, -bound, bound)
        b = jax.random.uniform(kb, (out_dim,), jnp.float32, -bound, bound)
        g = jnp.linalg.norm(v)                  # weight_norm(dim=None) init
        w_eff = (g / jnp.linalg.norm(v)) * v    # == v at init
        params.append((w_eff.T, b))             # store as [in_dim, out_dim]
    return params


def fcnet_forward(x, params, act="ReLU", compute_dtype=jnp.bfloat16):
    """FCNet.forward on the last dim of x; leading dims flattened to rows."""
    if act not in ("", "ReLU"):
        # TODO(synk): activations other than ReLU/identity not implemented.
        raise NotImplementedError(f"act={act!r}")
    packed = pack_fcnet_params(params, compute_dtype=compute_dtype)
    lead = x.shape[:-1]
    h = x.reshape(-1, x.shape[-1])
    y = fcnet_fused(h, packed, apply_relu=(act != ""),
                    compute_dtype=compute_dtype)
    return y.reshape(*lead, y.shape[-1])


def fcnet_reference(x, params, act="ReLU"):
    h = x
    for (w, b) in params:
        h = jnp.einsum("...k,kn->...n", h, w, precision="highest") + b
        if act != "":
            h = jnp.maximum(h, 0.0)
    return h


if __name__ == "__main__":
    key = jax.random.PRNGKey(0)
    k_x, k_p = jax.random.split(key)

    # FCNet(dims=[32, 64, 128], act='ReLU', dropout=0); input [batch, seq, 32].
    dims = [32, 64, 128]
    B, S = 2, 8
    x = jax.random.normal(k_x, (B, S, dims[0]), jnp.float32)
    params = init_fcnet_params(k_p, dims)

    ref = fcnet_reference(x, params)

    # Production config: bf16 weights / MXU path, f32 accumulate + bias + ReLU.
    out_bf16 = jax.block_until_ready(
        fcnet_forward(x, params, compute_dtype=jnp.bfloat16))
    # Exact-parity config: full f32 path.
    out_f32 = jax.block_until_ready(
        fcnet_forward(x, params, compute_dtype=jnp.float32))

    assert out_bf16.shape == (B, S, dims[-1])
    assert out_f32.shape == (B, S, dims[-1])
    assert jnp.allclose(out_f32, ref, atol=5e-3, rtol=5e-3), \
        float(jnp.max(jnp.abs(out_f32 - ref)))
    assert jnp.allclose(out_bf16, ref, atol=2e-2, rtol=2e-2), \
        float(jnp.max(jnp.abs(out_bf16 - ref)))

    print("KERNEL_OK")
</pallas_src>

<mosaic_0001>
module attributes {stable_mosaic.version = 11 : i64} {
  func.func @_fcnet_fused_kernel(%arg0: i32, %arg1: memref<16x32xf32, #tpu.memory_space<vmem>>, %arg2: memref<32x128xbf16, #tpu.memory_space<vmem>>, %arg3: memref<1x128xf32, #tpu.memory_space<vmem>>, %arg4: memref<128x128xbf16, #tpu.memory_space<vmem>>, %arg5: memref<1x128xf32, #tpu.memory_space<vmem>>, %arg6: memref<16x128xf32, #tpu.memory_space<vmem>>) attributes {dimension_semantics = [#tpu.dimension_semantics<parallel>], iteration_bounds = array<i64: 1>, scalar_prefetch = 0 : i64, scratch_operands = 0 : i64, tpu.core_type = #tpu.core_type<tc>, window_params = [{transform_indices = @transform_0, window_bounds = array<i64: 16, 32>}, {pipeline_mode = #tpu.pipeline_mode<synchronous>, transform_indices = @transform_1, window_bounds = array<i64: 32, 128>}, {pipeline_mode = #tpu.pipeline_mode<synchronous>, transform_indices = @transform_2, window_bounds = array<i64: 1, 128>}, {pipeline_mode = #tpu.pipeline_mode<synchronous>, transform_indices = @transform_3, window_bounds = array<i64: 128, 128>}, {pipeline_mode = #tpu.pipeline_mode<synchronous>, transform_indices = @transform_4, window_bounds = array<i64: 1, 128>}, {transform_indices = @transform_5, window_bounds = array<i64: 16, 128>}]} {
    %c0 = arith.constant 0 : index
    %c0_0 = arith.constant 0 : index
    %0 = vector.load %arg1[%c0, %c0_0] : memref<16x32xf32, #tpu.memory_space<vmem>>, vector<16x32xf32>
    %c0_1 = arith.constant 0 : index
    %c0_2 = arith.constant 0 : index
    %1 = vector.load %arg2[%c0_1, %c0_2] : memref<32x128xbf16, #tpu.memory_space<vmem>>, vector<32x128xbf16>
    %c0_3 = arith.constant 0 : index
    %c0_4 = arith.constant 0 : index
    %2 = vector.load %arg3[%c0_3, %c0_4] : memref<1x128xf32, #tpu.memory_space<vmem>>, vector<1x128xf32>
    %3 = arith.truncf %0 : vector<16x32xf32> to vector<16x32xbf16>
    %cst = arith.constant dense<0.000000e+00> : vector<16x128xf32>
    %4 = tpu.matmul %3, %1, %cst {dimension_numbers = #tpu.dot_dimension_numbers<[1], [0], [0], [1], [0, 0, 1, 1], [], []>} : vector<16x32xbf16>, vector<32x128xbf16>, vector<16x128xf32> -> vector<16x128xf32>
    %5 = vector.broadcast %2 : vector<1x128xf32> to vector<16x128xf32>
    %6 = arith.addf %4, %5 : vector<16x128xf32>
    %cst_5 = arith.constant 0.000000e+00 : f32
    %7 = vector.broadcast %cst_5 : f32 to vector<16x128xf32>
    %8 = arith.maximumf %6, %7 : vector<16x128xf32>
    %c0_6 = arith.constant 0 : index
    %c0_7 = arith.constant 0 : index
    %9 = vector.load %arg4[%c0_6, %c0_7] : memref<128x128xbf16, #tpu.memory_space<vmem>>, vector<128x128xbf16>
    %c0_8 = arith.constant 0 : index
    %c0_9 = arith.constant 0 : index
    %10 = vector.load %arg5[%c0_8, %c0_9] : memref<1x128xf32, #tpu.memory_space<vmem>>, vector<1x128xf32>
    %11 = arith.truncf %8 : vector<16x128xf32> to vector<16x128xbf16>
    %cst_10 = arith.constant dense<0.000000e+00> : vector<16x128xf32>
    %12 = tpu.matmul %11, %9, %cst_10 {dimension_numbers = #tpu.dot_dimension_numbers<[1], [0], [0], [1], [0, 0, 1, 1], [], []>} : vector<16x128xbf16>, vector<128x128xbf16>, vector<16x128xf32> -> vector<16x128xf32>
    %13 = vector.broadcast %10 : vector<1x128xf32> to vector<16x128xf32>
    %14 = arith.addf %12, %13 : vector<16x128xf32>
    %cst_11 = arith.constant 0.000000e+00 : f32
    %15 = vector.broadcast %cst_11 : f32 to vector<16x128xf32>
    %16 = arith.maximumf %14, %15 : vector<16x128xf32>
    %c0_12 = arith.constant 0 : index
    %c0_13 = arith.constant 0 : index
    %17 = vector.load %arg6[%c0_12, %c0_13] : memref<16x128xf32, #tpu.memory_space<vmem>>, vector<16x128xf32>
    tpu.vector_store %arg6[%c0_12, %c0_13], %16 {strides = array<i32>} : memref<16x128xf32, #tpu.memory_space<vmem>>, vector<16x128xf32>,
    return
  }
  func.func @transform_0(%arg0: i32) -> (i32, i32) {
    %c0_i32 = arith.constant 0 : i32
    %c0_i32_0 = arith.constant 0 : i32
    return %arg0, %c0_i32 : i32, i32
  }
  func.func @transform_1(%arg0: i32) -> (i32, i32) {
    %c0_i32 = arith.constant 0 : i32
    %c0_i32_0 = arith.constant 0 : i32
    %c0_i32_1 = arith.constant 0 : i32
    return %c0_i32, %c0_i32_0 : i32, i32
  }
  func.func @transform_2(%arg0: i32) -> (i32, i32) {
    %c0_i32 = arith.constant 0 : i32
    %c0_i32_0 = arith.constant 0 : i32
    %c0_i32_1 = arith.constant 0 : i32
    return %c0_i32, %c0_i32_0 : i32, i32
  }
  func.func @transform_3(%arg0: i32) -> (i32, i32) {
    %c0_i32 = arith.constant 0 : i32
    %c0_i32_0 = arith.constant 0 : i32
    %c0_i32_1 = arith.constant 0 : i32
    return %c0_i32, %c0_i32_0 : i32, i32
  }
  func.func @transform_4(%arg0: i32) -> (i32, i32) {
    %c0_i32 = arith.constant 0 : i32
    %c0_i32_0 = arith.constant 0 : i32
    %c0_i32_1 = arith.constant 0 : i32
    return %c0_i32, %c0_i32_0 : i32, i32
  }
  func.func @transform_5(%arg0: i32) -> (i32, i32) {
    %c0_i32 = arith.constant 0 : i32
    %c0_i32_0 = arith.constant 0 : i32
    return %arg0, %c0_i32 : i32, i32
  }
}

</mosaic_0001>

<bundles_post_ra>
// kernel: tpu_custom_call.1
= control target key start
LH: loop header
LB: loop body
LE: loop exit
PB: predicated region body
PF: predicated region fallthrough
CT: control target
= control target key end

     0   :  { %10 = vsyncpa [#allocation3], 0  ;;  %s544_s0 = inlined_call_operand.hbm [shape: f32[16,32], index: 0, kind: input, shape index: {}]   ;;  %s545_s1 = inlined_call_operand.hbm [shape: bf16[32,128], index: 1, kind: input, shape index: {}]   ;;  %s546_s2 = inlined_call_operand.vmem [shape: f32[1,128], index: 2, kind: input, shape index: {}]   ;;  %s547_s3 = inlined_call_operand.hbm [shape: bf16[128,128], index: 3, kind: input, shape index: {}]   ;;  %s548_s4 = inlined_call_operand.vmem [shape: f32[1,128], index: 4, kind: input, shape index: {}]   ;;  %s549_s5 = inlined_call_operand.hbm [shape: f32[16,128], index: 5, kind: output, shape index: {}]  }
   0x1   :  { %11 = vsyncpa [#allocation6], 0 }
   0x2   :  { %12 = vsyncpa [#allocation4], 0  ;;  %s438_s18 = smov [#allocation5]   ;;  %s344_s22 = scalar_lea.hbm %s545_s1, 256 }
   0x3   :  { %s30_s19 = sshll.u32 %s438_s18, 4  ;;  %p345_p0 = scmp.ne.s32.totalorder %s545_s1, %s344_s22  ;;  %s31_s19 = int_to_ptr.vmem [resolvable:$true] %s30_s19 }
   0x4   :  { %p348_p1 = scmp.lt.u32.totalorder %s344_s22, %s545_s1 }
   0x6   :  { %p350_p2 = pnand %p348_p1, %p345_p0 }
   0x8   :  { %353 = shalt.err (!%p350_p2)
}
   0x9   :  { %s354_s27 = scalar_lea.vmem %s31_s19, 256  ;;  %p359_p4 = scmp.lt.s32.totalorder %s31_s19, %s31_s19 }
   0xa   :  { %p355_p3 = scmp.ne.s32.totalorder %s31_s19, %s354_s27  ;;  %p360_p5 = scmp.lt.s32.totalorder %s354_s27, %s354_s27 }
   0xc   :  { %p361_p6 = por %p360_p5, %p359_p4 }
   0xe   :  { %p362_p7 = pnand %p361_p6, %p355_p3 }
  0x10   :  { %365 = shalt.err (!%p362_p7)
}
  0x11   :  { %s439_s28 = smov 64   ;;  %s440_s29 = smov 4  }
  0x12   :  { %36 = dma.hbm_to_vmem [thread:$0]  %s545_s1, 256, %s31_s19, [#allocation6], %s439_s28, %s439_s28, %s440_s29  }
  0x13   :  { %s441_s7 = smov [#allocation2]   ;;  %s366_s11 = scalar_lea.hbm %s544_s0, 256 }
  0x14   :  { %s18_s8 = sshll.u32 %s441_s7, 4  ;;  %p367_p8 = scmp.ne.s32.totalorder %s544_s0, %s366_s11  ;;  %s19_s8 = int_to_ptr.vmem [resolvable:$true] %s18_s8 }
  0x15   :  { %p370_p9 = scmp.lt.u32.totalorder %s366_s11, %s544_s0 }
  0x17   :  { %p372_p10 = pnand %p370_p9, %p367_p8 }
  0x19   :  { %375 = shalt.err (!%p372_p10)
}
  0x1a   :  { %s376_s16 = scalar_lea.vmem %s19_s8, 256  ;;  %p381_p12 = scmp.lt.s32.totalorder %s19_s8, %s19_s8 }
  0x1b   :  { %p377_p11 = scmp.ne.s32.totalorder %s19_s8, %s376_s16  ;;  %p382_p13 = scmp.lt.s32.totalorder %s376_s16, %s376_s16 }
  0x1d   :  { %p383_p0 = por %p382_p13, %p381_p12 }
  0x1f   :  { %p384_p1 = pnand %p383_p0, %p377_p11 }
  0x21   :  { %387 = shalt.err (!%p384_p1)
}
  0x22   :  { %s442_s1 = smov 128   ;;  %s443_s17 = smov 8  }
  0x23   :  { %24 = dma.hbm_to_vmem [thread:$0]  %s544_s0, 256, %s19_s8, [#allocation3], %s442_s1, %s442_s1, %s443_s17  }
  0x24   :  { %s444_s20 = smov [#allocation7]   ;;  %s388_s24 = scalar_lea.hbm %s547_s3, 1024 }
  0x25   :  { %s44_s21 = sshll.u32 %s444_s20, 4  ;;  %p389_p2 = scmp.ne.s32.totalorder %s547_s3, %s388_s24  ;;  %s45_s21 = int_to_ptr.vmem [resolvable:$true] %s44_s21 }
  0x26   :  { %p392_p3 = scmp.lt.u32.totalorder %s388_s24, %s547_s3 }
  0x28   :  { %p394_p4 = pnand %p392_p3, %p389_p2 }
  0x2a   :  { %397 = shalt.err (!%p394_p4)
}
  0x2b   :  { %s398_s6 = scalar_lea.vmem %s45_s21, 1024  ;;  %p403_p6 = scmp.lt.s32.totalorder %s45_s21, %s45_s21 }
  0x2c   :  { %p399_p5 = scmp.ne.s32.totalorder %s45_s21, %s398_s6  ;;  %p404_p7 = scmp.lt.s32.totalorder %s398_s6, %s398_s6 }
  0x2e   :  { %p405_p8 = por %p404_p7, %p403_p6 }
  0x30   :  { %p406_p9 = pnand %p405_p8, %p399_p5 }
  0x32   :  { %409 = shalt.err (!%p406_p9)
}
  0x33   :  { %50 = dma.hbm_to_vmem [thread:$0]  %s547_s3, 1024, %s45_s21, [#allocation6], %s439_s28, %s439_s28, %s440_s29  }
  0x34   :  { %432 = dma.done.wait [#allocation3], 256  }
  0x35   :  { %433 = vsyncadd [#allocation3], 4294967040 }
  0x36   :  { %434 = dma.done.wait [#allocation6], 1280  }
  0x37   :  { %435 = vsyncadd [#allocation6], 4294966016  ;;  %v445_v0 = vmov 0.0   ;;  %vm446_vm0 = vmmov 0   ;;  %v334_v1 = vld [vmem:[#allocation5] sm:$0xff]   ;;  %v335_v2 = vld [vmem:[#allocation5 + $0x8] sm:$0xff]  }
  0x38   :  { %296 = vmatprep.subr.bf16.mxu0 %v445_v0  ;;  %300 = vmatprep.mubr.msk.bf16.mxu0 %vm446_vm0, %v445_v0  ;;  %v63_v3 = vld [vmem:[#allocation2] sm:$0xff]  ;;  %v64_v4 = vld [vmem:[#allocation2 + $0x8] sm:$0xff]  ;;  %vm89_vm1 = vcmask 261120   ;;  %v338_v8 = vld [vmem:[#allocation7 + $0x10] sm:$0xff]   ;;  %s447_s9 = smov [#allocation8]  }
  0x39   :  { %304 = vmatprep.subr.bf16.mxu1 %v445_v0  ;;  %320 = vmatprep.mubr.msk.bf16.mxu1 %vm446_vm0, %v445_v0  ;;  %v336_v5 = vld [vmem:[#allocation7] sm:$0xff]   ;;  %v70_v6 = vpack.c.bf16 %v64_v4, %v63_v3  ;;  %v337_v7 = vld [vmem:[#allocation7 + $0x8] sm:$0xff]   ;;  %v339_v9 = vld [vmem:[#allocation7 + $0x18] sm:$0xff]  }
  0x3a   :  { %297 = vmatpush3.bf16.msra.mxu0 %v334_v1  ;;  %305 = vmatpush3.bf16.msra.mxu1 %v336_v5  ;;  %v340_v10 = vld [vmem:[#allocation7 + $0x20] sm:$0xff]   ;;  %v341_v11 = vld [vmem:[#allocation7 + $0x28] sm:$0xff]   ;;  %v342_v12 = vld [vmem:[#allocation7 + $0x30] sm:$0xff]  }
  0x3b   :  { %298 = vmatprep.subr.bf16.mxu0 %v445_v0  ;;  %306 = vmatprep.subr.bf16.mxu1 %v445_v0  ;;  %v343_v13 = vld [vmem:[#allocation7 + $0x38] sm:$0xff]   ;;  %v271_v14 = vld [vmem:[%s546_s2] ss:$0 sm:$0xff]  ;;  %s258_s2 = sshll.u32 %s447_s9, 4  ;;  %s259_s2 = int_to_ptr.vmem [resolvable:$true] %s258_s2 }
  0x3c   :  { %v275_v24 = vld [vmem:[%s548_s4] ss:$0 sm:$0xff]  ;;  %s410_s10 = scalar_lea.vmem %s259_s2, 256  ;;  %p415_p11 = scmp.lt.s32.totalorder %s259_s2, %s259_s2 }
  0x3d   :  { %p411_p10 = scmp.ne.s32.totalorder %s259_s2, %s410_s10  ;;  %p416_p12 = scmp.lt.s32.totalorder %s410_s10, %s410_s10 }
  0x3e   :  { %299 = vmatpush3.bf16.msra.mxu0 %v335_v2  ;;  %307 = vmatpush3.bf16.msra.mxu1 %v337_v7 }
  0x3f   :  { %308 = vmatprep.subr.bf16.mxu1 %v445_v0  ;;  %p417_p13 = por %p416_p12, %p415_p11 }
  0x41   :  { %301 = vmatmul.mubr.msk.bf16.vlgmr.msra.gmra.mrb[0].mxu0 %vm89_vm1, %v70_v6  ;;  %p418_p0 = pnand %p417_p13, %p411_p10 }
  0x42   :  { %309 = vmatpush3.bf16.msra.mxu1 %v338_v8 }
  0x43   :  { %310 = vmatprep.subr.bf16.mxu1 %v445_v0 }
  0x46   :  { %311 = vmatpush3.bf16.msra.mxu1 %v339_v9 }
  0x47   :  { %312 = vmatprep.subr.bf16.mxu1 %v445_v0 }
  0x4a   :  { %313 = vmatpush3.bf16.msra.mxu1 %v340_v10 }
  0x4b   :  { %314 = vmatprep.subr.bf16.mxu1 %v445_v0 }
  0x4e   :  { %315 = vmatpush3.bf16.msra.mxu1 %v341_v11 }
  0x4f   :  { %316 = vmatprep.subr.bf16.mxu1 %v445_v0 }
  0x52   :  { %317 = vmatpush3.bf16.msra.mxu1 %v342_v12 }
  0x53   :  { %318 = vmatprep.subr.bf16.mxu1 %v445_v0 }
  0x56   :  { %319 = vmatpush3.bf16.msra.mxu1 %v343_v13 }
 0x114   :  { %v127_v15 = vpop.f32.mrb[0].mxu0 }
 0x115   :  { %v128_v16 = vadd.f32 %v271_v14, %v127_v15  ;;  %v302_v17 = vpop.f32.mrb[1].mxu0 }
 0x116   :  { %v130_v18 = vpop.f32.mrb[2].mxu0 }
 0x117   :  { %v131_v19 = vadd.f32 %v271_v14, %v130_v18  ;;  %v303_v20 = vpop.f32.mrb[3].mxu0  ;;  %v134_v21 = vmax.f32 %v128_v16, 0.0 }
 0x119   :  { %v135_v22 = vmax.f32 %v131_v19, 0.0 }
 0x11b   :  { %v153_v23 = vpack.c.bf16 %v135_v22, %v134_v21 }
 0x11d   :  { %321 = vmatmul.mubr.bf16.vlgmr.msra.gmra.mrb[0].mxu1 %v153_v23 }
 0x1f0   :  { %v242_v25 = vpop.f32.mrb[0].mxu1 }
 0x1f1   :  { %v243_v26 = vadd.f32 %v275_v24, %v242_v25  ;;  %v322_v27 = vpop.f32.mrb[1].mxu1 }
 0x1f2   :  { %v245_v28 = vpop.f32.mrb[2].mxu1 }
 0x1f3   :  { %v249_v29 = vmax.f32 %v243_v26, 0.0  ;;  %v246_v30 = vadd.f32 %v275_v24, %v245_v28  ;;  %v323_v31 = vpop.f32.mrb[3].mxu1 }
 0x1f5   :  { %251 = vst [vmem:[#allocation8] sm:$0xff] %v249_v29  ;;  %v250_v32 = vmax.f32 %v246_v30, 0.0 }
 0x1f7   :  { %252 = vst [vmem:[#allocation8 + $0x8] sm:$0xff] %v250_v32 }
 0x1f8   :  { %421 = shalt.err (!%p418_p0)
}
 0x1f9   :  { %s422_s12 = scalar_lea.hbm %s549_s5, 256 }
 0x1fa   :  { %p423_p1 = scmp.ne.s32.totalorder %s549_s5, %s422_s12  ;;  %p426_p2 = scmp.lt.u32.totalorder %s422_s12, %s549_s5 }
 0x1fc   :  { %p428_p3 = pnand %p426_p2, %p423_p1 }
 0x1fe   :  { %431 = shalt.err (!%p428_p3)
}
 0x1ff   :  { %264 = dma.vmem_to_hbm [thread:$0]  %s259_s2, 256, %s549_s5, [#allocation4], %s442_s1, %s442_s1, %s443_s17  }
 0x200   :  { %436 = dma.done.wait [#allocation4], 256  }
 0x201   :  { %437 = vsyncadd [#allocation4], 4294967040 }
 0x202   :  { %268 = vsyncpa [#allocation3], 1 }
 0x203   :  { %269 = vsyncpa [#allocation6], 1 }
 0x204   :  { %270 = vsyncpa [#allocation4], 1 }

</bundles_post_ra>
